<compile_context>
chip_gen: v7x
topology: tpu7x:2x2x1
jax: 0.10.0
libtpu: 0.0.40
codegen_flags: <defaults>
</compile_context>

<pallas_src>
import functools

import jax
import jax.numpy as jnp
from jax.experimental import pallas as pl
from jax.experimental.pallas import tpu as pltpu


def _round_up(x, m):
    return ((x + m - 1) // m) * m


def _stacked_gru_kernel(x_ref, h0_ref, w_ih_ref, w_hh_ref, b_ih_ref, b_hh_ref,
                        hs_ref, carry_ref, *, hidden_size, carry_dim):
    """One grid step == one GRU layer; carry_ref holds the current layer input."""
    H = hidden_size
    K = carry_dim
    layer = pl.program_id(0)

    # Layer 0 input comes from x (already zero-padded to K lanes).
    @pl.when(layer == 0)
    def _():
        carry_ref[...] = x_ref[...]

    inp = carry_ref[...]                       # (B, K) f32, carried across layers
    h = h0_ref[0]                              # (B, H) f32

    # bf16 weights on the MXU, f32 accumulation; biases stay f32.
    gi = jnp.dot(inp.astype(jnp.bfloat16), w_ih_ref[0],
                 preferred_element_type=jnp.float32) + b_ih_ref[0]
    gh = jnp.dot(h.astype(jnp.bfloat16), w_hh_ref[0],
                 preferred_element_type=jnp.float32) + b_hh_ref[0]

    # H is a multiple of 128 -> gate slices are lane-aligned.
    r = jax.nn.sigmoid(gi[:, 0:H] + gh[:, 0:H])
    z = jax.nn.sigmoid(gi[:, H:2 * H] + gh[:, H:2 * H])
    n = jnp.tanh(gi[:, 2 * H:3 * H] + r * gh[:, 2 * H:3 * H])
    h_new = (1.0 - z) * n + z * h              # f32 state blend

    hs_ref[0] = h_new.astype(hs_ref.dtype)

    # Carry to the next layer (eval-mode dropout == identity). Lanes beyond H
    # only ever hit zero-padded W_ih rows, but keep them clean anyway.
    if K == H:
        carry_ref[...] = h_new
    else:
        carry_ref[:, 0:H] = h_new
        carry_ref[:, H:] = jnp.zeros((h_new.shape[0], K - H), jnp.float32)


def stacked_gru_cell_forward(x, hidden, w_ih_t, w_hh_t, b_ih, b_hh):
    """Mirrors StackedGRUCell.forward (inference-mode dropout == identity).

    Args:
      x:       (batch, input_size) f32
      hidden:  (num_layers, batch, rnn_size) f32
      w_ih_t:  (num_layers, K, 3*rnn_size) bf16, zero-padded along K
      w_hh_t:  (num_layers, rnn_size, 3*rnn_size) bf16
      b_ih:    (num_layers, 1, 3*rnn_size) f32
      b_hh:    (num_layers, 1, 3*rnn_size) f32
    Returns:
      (output, hs): output (batch, rnn_size), hs (num_layers, batch, rnn_size)
    """
    L, K, threeH = w_ih_t.shape
    H = threeH // 3
    B = x.shape[0]

    x_pad = jnp.pad(x.astype(jnp.float32), ((0, 0), (0, K - x.shape[1])))

    kernel = functools.partial(_stacked_gru_kernel, hidden_size=H, carry_dim=K)

    hs = pl.pallas_call(
        kernel,
        out_shape=jax.ShapeDtypeStruct((L, B, H), jnp.float32),
        grid_spec=pltpu.PrefetchScalarGridSpec(
            num_scalar_prefetch=0,
            grid=(L,),
            in_specs=[
                pl.BlockSpec((B, K), lambda l: (0, 0)),              # x (fetched once)
                pl.BlockSpec((1, B, H), lambda l: (l, 0, 0)),        # hidden[l]
                pl.BlockSpec((1, K, threeH), lambda l: (l, 0, 0)),   # W_ih[l]  (bf16)
                pl.BlockSpec((1, H, threeH), lambda l: (l, 0, 0)),   # W_hh[l]  (bf16)
                pl.BlockSpec((1, 1, threeH), lambda l: (l, 0, 0)),   # b_ih[l]
                pl.BlockSpec((1, 1, threeH), lambda l: (l, 0, 0)),   # b_hh[l]
            ],
            out_specs=pl.BlockSpec((1, B, H), lambda l: (l, 0, 0)),
            scratch_shapes=[pltpu.VMEM((B, K), jnp.float32)],        # carried activation
        ),
        compiler_params=pltpu.CompilerParams(
            dimension_semantics=("arbitrary",)),   # layers are strictly sequential
    )(x_pad, hidden, w_ih_t, w_hh_t, b_ih, b_hh)

    return hs[-1], hs


def init_stacked_gru_params(key, num_layers, input_size, rnn_size,
                            weight_dtype=jnp.bfloat16):
    """nn.GRUCell-style init (uniform +-1/sqrt(H)), stacked & padded for the kernel."""
    H = rnn_size
    K = _round_up(max(input_size, rnn_size), 128)
    bound = 1.0 / (rnn_size ** 0.5)

    w_ih_l, w_hh_l, b_ih_l, b_hh_l = [], [], [], []
    in_size = input_size
    for _ in range(num_layers):
        key, k1, k2, k3, k4 = jax.random.split(key, 5)
        w_ih = jax.random.uniform(k1, (3 * H, in_size), jnp.float32, -bound, bound)
        w_hh = jax.random.uniform(k2, (3 * H, H), jnp.float32, -bound, bound)
        b_ih = jax.random.uniform(k3, (3 * H,), jnp.float32, -bound, bound)
        b_hh = jax.random.uniform(k4, (3 * H,), jnp.float32, -bound, bound)
        # Transposed to (in, 3H) for x @ W^T; zero-pad the contraction axis to K.
        w_ih_l.append(jnp.zeros((K, 3 * H), jnp.float32).at[:in_size].set(w_ih.T))
        w_hh_l.append(w_hh.T)                       # (H, 3H)
        b_ih_l.append(b_ih.reshape(1, -1))          # (1, 3H)
        b_hh_l.append(b_hh.reshape(1, -1))
        in_size = H

    return {
        "w_ih_t": jnp.stack(w_ih_l).astype(weight_dtype),   # (L, K, 3H)
        "w_hh_t": jnp.stack(w_hh_l).astype(weight_dtype),   # (L, H, 3H)
        "b_ih": jnp.stack(b_ih_l),                           # (L, 1, 3H) f32
        "b_hh": jnp.stack(b_hh_l),                           # (L, 1, 3H) f32
    }


if __name__ == "__main__":
    num_layers = 3
    batch = 8
    input_size = 96     # != rnn_size to exercise the layer-0 zero-padding path
    rnn_size = 128

    key = jax.random.PRNGKey(0)
    kx, kh, kp = jax.random.split(key, 3)

    x = jax.random.normal(kx, (batch, input_size), jnp.float32)
    hidden = jax.random.normal(kh, (num_layers, batch, rnn_size), jnp.float32)
    p = init_stacked_gru_params(kp, num_layers, input_size, rnn_size)

    fwd = jax.jit(stacked_gru_cell_forward)
    out, hs = fwd(x, hidden, p["w_ih_t"], p["w_hh_t"], p["b_ih"], p["b_hh"])
    jax.block_until_ready((out, hs))

    # Pure-JAX reference using the same bf16 weights / bf16 matmul inputs.
    def ref_forward(x, hidden, p):
        H = rnn_size
        K = p["w_ih_t"].shape[1]
        inp = jnp.pad(x, ((0, 0), (0, K - x.shape[1])))
        hs_ref = []
        for l in range(num_layers):
            gi = jnp.dot(inp.astype(jnp.bfloat16), p["w_ih_t"][l],
                         preferred_element_type=jnp.float32) + p["b_ih"][l]
            gh = jnp.dot(hidden[l].astype(jnp.bfloat16), p["w_hh_t"][l],
                         preferred_element_type=jnp.float32) + p["b_hh"][l]
            r = jax.nn.sigmoid(gi[:, :H] + gh[:, :H])
            z = jax.nn.sigmoid(gi[:, H:2 * H] + gh[:, H:2 * H])
            n = jnp.tanh(gi[:, 2 * H:] + r * gh[:, 2 * H:])
            h_i = (1.0 - z) * n + z * hidden[l]
            hs_ref.append(h_i)
            inp = jnp.pad(h_i, ((0, 0), (0, K - H)))
        return hs_ref[-1], jnp.stack(hs_ref, 0)

    out_ref, hs_ref = ref_forward(x, hidden, p)
    assert out.shape == (batch, rnn_size)
    assert hs.shape == (num_layers, batch, rnn_size)
    assert jnp.allclose(out, out_ref, atol=1e-2, rtol=1e-2), "output mismatch"
    assert jnp.allclose(hs, hs_ref, atol=1e-2, rtol=1e-2), "hidden stack mismatch"

    print("KERNEL_OK")
</pallas_src>

<mosaic_0001>
module attributes {stable_mosaic.version = 11 : i64} {
  func.func @_stacked_gru_kernel(%arg0: i32, %arg1: memref<8x128xf32, #tpu.memory_space<vmem>>, %arg2: memref<1x8x128xf32, #tpu.memory_space<vmem>>, %arg3: memref<1x128x384xbf16, #tpu.memory_space<vmem>>, %arg4: memref<1x128x384xbf16, #tpu.memory_space<vmem>>, %arg5: memref<1x1x384xf32, #tpu.memory_space<vmem>>, %arg6: memref<1x1x384xf32, #tpu.memory_space<vmem>>, %arg7: memref<1x8x128xf32, #tpu.memory_space<vmem>>, %arg8: memref<8x128xf32, #tpu.memory_space<vmem>>) attributes {dimension_semantics = [#tpu.dimension_semantics<arbitrary>], iteration_bounds = array<i64: 3>, scalar_prefetch = 0 : i64, scratch_operands = 1 : i64, tpu.core_type = #tpu.core_type<tc>, window_params = [{pipeline_mode = #tpu.pipeline_mode<synchronous>, transform_indices = @transform_0, window_bounds = array<i64: 8, 128>}, {transform_indices = @transform_1, window_bounds = array<i64: 1, 8, 128>}, {transform_indices = @transform_2, window_bounds = array<i64: 1, 128, 384>}, {transform_indices = @transform_3, window_bounds = array<i64: 1, 128, 384>}, {transform_indices = @transform_4, window_bounds = array<i64: 1, 1, 384>}, {transform_indices = @transform_5, window_bounds = array<i64: 1, 1, 384>}, {transform_indices = @transform_6, window_bounds = array<i64: 1, 8, 128>}]} {
    %c0_i32 = arith.constant 0 : i32
    %0 = arith.cmpi eq, %arg0, %c0_i32 : i32
    %1 = arith.extui %0 : i1 to i32
    %c0_i32_0 = arith.constant 0 : i32
    %2 = arith.cmpi ne, %1, %c0_i32_0 : i32
    scf.if %2 {
      %c0_26 = arith.constant 0 : index
      %c0_27 = arith.constant 0 : index
      %52 = vector.load %arg1[%c0_26, %c0_27] : memref<8x128xf32, #tpu.memory_space<vmem>>, vector<8x128xf32>
      %c0_28 = arith.constant 0 : index
      %c0_29 = arith.constant 0 : index
      %53 = vector.load %arg8[%c0_28, %c0_29] : memref<8x128xf32, #tpu.memory_space<vmem>>, vector<8x128xf32>
      tpu.vector_store %arg8[%c0_28, %c0_29], %52 {strides = array<i32>} : memref<8x128xf32, #tpu.memory_space<vmem>>, vector<8x128xf32>,
    } else {
    }
    %c0 = arith.constant 0 : index
    %c0_1 = arith.constant 0 : index
    %3 = vector.load %arg8[%c0, %c0_1] : memref<8x128xf32, #tpu.memory_space<vmem>>, vector<8x128xf32>
    %c0_2 = arith.constant 0 : index
    %c0_3 = arith.constant 0 : index
    %c0_4 = arith.constant 0 : index
    %4 = vector.load %arg2[%c0_2, %c0_3, %c0_4] : memref<1x8x128xf32, #tpu.memory_space<vmem>>, vector<1x8x128xf32>
    %5 = vector.shape_cast %4 : vector<1x8x128xf32> to vector<8x128xf32>
    %6 = arith.truncf %3 : vector<8x128xf32> to vector<8x128xbf16>
    %c0_5 = arith.constant 0 : index
    %c0_6 = arith.constant 0 : index
    %c0_7 = arith.constant 0 : index
    %7 = vector.load %arg3[%c0_5, %c0_6, %c0_7] : memref<1x128x384xbf16, #tpu.memory_space<vmem>>, vector<1x128x384xbf16>
    %8 = vector.shape_cast %7 : vector<1x128x384xbf16> to vector<128x384xbf16>
    %cst = arith.constant dense<0.000000e+00> : vector<8x384xf32>
    %9 = tpu.matmul %6, %8, %cst {dimension_numbers = #tpu.dot_dimension_numbers<[1], [0], [0], [1], [0, 0, 1, 1], [], []>} : vector<8x128xbf16>, vector<128x384xbf16>, vector<8x384xf32> -> vector<8x384xf32>
    %c0_8 = arith.constant 0 : index
    %c0_9 = arith.constant 0 : index
    %c0_10 = arith.constant 0 : index
    %10 = vector.load %arg5[%c0_8, %c0_9, %c0_10] : memref<1x1x384xf32, #tpu.memory_space<vmem>>, vector<1x1x384xf32>
    %11 = vector.shape_cast %10 : vector<1x1x384xf32> to vector<1x384xf32>
    %12 = vector.broadcast %11 : vector<1x384xf32> to vector<8x384xf32>
    %13 = arith.addf %9, %12 : vector<8x384xf32>
    %14 = arith.truncf %5 : vector<8x128xf32> to vector<8x128xbf16>
    %c0_11 = arith.constant 0 : index
    %c0_12 = arith.constant 0 : index
    %c0_13 = arith.constant 0 : index
    %15 = vector.load %arg4[%c0_11, %c0_12, %c0_13] : memref<1x128x384xbf16, #tpu.memory_space<vmem>>, vector<1x128x384xbf16>
    %16 = vector.shape_cast %15 : vector<1x128x384xbf16> to vector<128x384xbf16>
    %cst_14 = arith.constant dense<0.000000e+00> : vector<8x384xf32>
    %17 = tpu.matmul %14, %16, %cst_14 {dimension_numbers = #tpu.dot_dimension_numbers<[1], [0], [0], [1], [0, 0, 1, 1], [], []>} : vector<8x128xbf16>, vector<128x384xbf16>, vector<8x384xf32> -> vector<8x384xf32>
    %c0_15 = arith.constant 0 : index
    %c0_16 = arith.constant 0 : index
    %c0_17 = arith.constant 0 : index
    %18 = vector.load %arg6[%c0_15, %c0_16, %c0_17] : memref<1x1x384xf32, #tpu.memory_space<vmem>>, vector<1x1x384xf32>
    %19 = vector.shape_cast %18 : vector<1x1x384xf32> to vector<1x384xf32>
    %20 = vector.broadcast %19 : vector<1x384xf32> to vector<8x384xf32>
    %21 = arith.addf %17, %20 : vector<8x384xf32>
    %22 = vector.extract_strided_slice %13 {offsets = [0, 0], sizes = [8, 128], strides = [1, 1]} : vector<8x384xf32> to vector<8x128xf32>
    %23 = vector.extract_strided_slice %21 {offsets = [0, 0], sizes = [8, 128], strides = [1, 1]} : vector<8x384xf32> to vector<8x128xf32>
    %24 = arith.addf %22, %23 : vector<8x128xf32>
    %25 = arith.negf %24 : vector<8x128xf32>
    %26 = math.exp %25 : vector<8x128xf32>
    %cst_18 = arith.constant 1.000000e+00 : f32
    %27 = vector.broadcast %cst_18 : f32 to vector<8x128xf32>
    %28 = arith.addf %27, %26 : vector<8x128xf32>
    %29 = arith.divf %27, %28 : vector<8x128xf32>
    %30 = vector.extract_strided_slice %13 {offsets = [0, 128], sizes = [8, 128], strides = [1, 1]} : vector<8x384xf32> to vector<8x128xf32>
    %31 = vector.extract_strided_slice %21 {offsets = [0, 128], sizes = [8, 128], strides = [1, 1]} : vector<8x384xf32> to vector<8x128xf32>
    %32 = arith.addf %30, %31 : vector<8x128xf32>
    %33 = arith.negf %32 : vector<8x128xf32>
    %34 = math.exp %33 : vector<8x128xf32>
    %cst_19 = arith.constant 1.000000e+00 : f32
    %35 = vector.broadcast %cst_19 : f32 to vector<8x128xf32>
    %36 = arith.addf %35, %34 : vector<8x128xf32>
    %37 = arith.divf %35, %36 : vector<8x128xf32>
    %38 = vector.extract_strided_slice %13 {offsets = [0, 256], sizes = [8, 128], strides = [1, 1]} : vector<8x384xf32> to vector<8x128xf32>
    %39 = vector.extract_strided_slice %21 {offsets = [0, 256], sizes = [8, 128], strides = [1, 1]} : vector<8x384xf32> to vector<8x128xf32>
    %40 = arith.mulf %29, %39 : vector<8x128xf32>
    %41 = arith.addf %38, %40 : vector<8x128xf32>
    %42 = math.tanh %41 : vector<8x128xf32>
    %cst_20 = arith.constant 1.000000e+00 : f32
    %43 = vector.broadcast %cst_20 : f32 to vector<8x128xf32>
    %44 = arith.subf %43, %37 : vector<8x128xf32>
    %45 = arith.mulf %44, %42 : vector<8x128xf32>
    %46 = arith.mulf %37, %5 : vector<8x128xf32>
    %47 = arith.addf %45, %46 : vector<8x128xf32>
    %c0_21 = arith.constant 0 : index
    %c0_22 = arith.constant 0 : index
    %c0_23 = arith.constant 0 : index
    %48 = vector.load %arg7[%c0_21, %c0_22, %c0_23] : memref<1x8x128xf32, #tpu.memory_space<vmem>>, vector<1x8x128xf32>
    %49 = vector.shape_cast %48 : vector<1x8x128xf32> to vector<8x128xf32>
    %50 = vector.shape_cast %47 : vector<8x128xf32> to vector<1x8x128xf32>
    tpu.vector_store %arg7[%c0_21, %c0_22, %c0_23], %50 {strides = array<i32>} : memref<1x8x128xf32, #tpu.memory_space<vmem>>, vector<1x8x128xf32>,
    %c0_24 = arith.constant 0 : index
    %c0_25 = arith.constant 0 : index
    %51 = vector.load %arg8[%c0_24, %c0_25] : memref<8x128xf32, #tpu.memory_space<vmem>>, vector<8x128xf32>
    tpu.vector_store %arg8[%c0_24, %c0_25], %47 {strides = array<i32>} : memref<8x128xf32, #tpu.memory_space<vmem>>, vector<8x128xf32>,
    return
  }
  func.func @transform_0(%arg0: i32) -> (i32, i32) {
    %c0_i32 = arith.constant 0 : i32
    %c0_i32_0 = arith.constant 0 : i32
    %c0_i32_1 = arith.constant 0 : i32
    return %c0_i32, %c0_i32_0 : i32, i32
  }
  func.func @transform_1(%arg0: i32) -> (i32, i32, i32) {
    %c0_i32 = arith.constant 0 : i32
    %c0_i32_0 = arith.constant 0 : i32
    %c0_i32_1 = arith.constant 0 : i32
    return %arg0, %c0_i32, %c0_i32_0 : i32, i32, i32
  }
  func.func @transform_2(%arg0: i32) -> (i32, i32, i32) {
    %c0_i32 = arith.constant 0 : i32
    %c0_i32_0 = arith.constant 0 : i32
    %c0_i32_1 = arith.constant 0 : i32
    return %arg0, %c0_i32, %c0_i32_0 : i32, i32, i32
  }
  func.func @transform_3(%arg0: i32) -> (i32, i32, i32) {
    %c0_i32 = arith.constant 0 : i32
    %c0_i32_0 = arith.constant 0 : i32
    %c0_i32_1 = arith.constant 0 : i32
    return %arg0, %c0_i32, %c0_i32_0 : i32, i32, i32
  }
  func.func @transform_4(%arg0: i32) -> (i32, i32, i32) {
    %c0_i32 = arith.constant 0 : i32
    %c0_i32_0 = arith.constant 0 : i32
    %c0_i32_1 = arith.constant 0 : i32
    return %arg0, %c0_i32, %c0_i32_0 : i32, i32, i32
  }
  func.func @transform_5(%arg0: i32) -> (i32, i32, i32) {
    %c0_i32 = arith.constant 0 : i32
    %c0_i32_0 = arith.constant 0 : i32
    %c0_i32_1 = arith.constant 0 : i32
    return %arg0, %c0_i32, %c0_i32_0 : i32, i32, i32
  }
  func.func @transform_6(%arg0: i32) -> (i32, i32, i32) {
    %c0_i32 = arith.constant 0 : i32
    %c0_i32_0 = arith.constant 0 : i32
    %c0_i32_1 = arith.constant 0 : i32
    return %arg0, %c0_i32, %c0_i32_0 : i32, i32, i32
  }
}

</mosaic_0001>

<bundles_post_ra>
// kernel: stacked_gru_cell_forward.1
= control target key start
LH: loop header
LB: loop body
LE: loop exit
PB: predicated region body
PF: predicated region fallthrough
CT: control target
= control target key end

     0   :  { %11 = vsyncpa [#allocation4], 0  ;;  %s1788_s0 = inlined_call_operand.vmem [shape: f32[8,128], index: 0, kind: input, shape index: {}]   ;;  %s1789_s1 = inlined_call_operand.hbm [shape: f32[3,8,128], index: 1, kind: input, shape index: {}]   ;;  %s1790_s2 = inlined_call_operand.hbm [shape: bf16[3,128,384], index: 2, kind: input, shape index: {}]   ;;  %s1791_s3 = inlined_call_operand.hbm [shape: bf16[3,128,384], index: 3, kind: input, shape index: {}]   ;;  %s1792_s4 = inlined_call_operand.vmem [shape: f32[3,1,384], index: 4, kind: input, shape index: {}]   ;;  %s1793_s5 = inlined_call_operand.vmem [shape: f32[3,1,384], index: 5, kind: input, shape index: {}]   ;;  %s1794_s6 = inlined_call_operand.vmem [shape: f32[3,8,128], index: 6, kind: output, shape index: {}]  }
   0x1   :  { %13 = vsyncpa [#allocation4 + $0x1], 0 }
   0x2   :  { %14 = vsyncpa [#allocation6], 0 }
   0x3   :  { %16 = vsyncpa [#allocation6 + $0x1], 0  ;;  %s1496_s21 = smov 0   ;;  %s1498_s22 = smov 0  }
   0x4   :  { %s1500_s23 = smov 0   ;;  %s1502_s24 = smov 0  }
   0x5 LB: > { %s1515_s25 = sadd.s32 4294967295, %s1451_s24   ;;  %s1518_s26 = sadd.s32 1, %s1451_s24   ;;  %s1451_s24 = sphi %s1502_s24, %s1816_s24   ;;  %s1447_s23 = sphi %s1500_s23, %s1815_s23   ;;  %s1443_s22 = sphi %s1498_s22, %s1814_s22   ;;  %s1439_s21 = sphi %s1496_s21, %s1813_s21  }
   0x6   : > { %s47_s27 = ssub.s32 %s1451_s24, %s1518_s26  ;;  %s50_s28 = sadd.s32 1, %s1447_s23 }
   0x7   : > { %p48_p0 = scmp.eq.s32.totalorder %s47_s27, 0  ;;  %p57_p1 = scmp.ne.s32.totalorder %s1447_s23, %s1443_s22 }
   0x8   : > { %p58_p2 = scmp.eq.s32.totalorder %s1451_s24, 0  ;;  %p63_p3 = scmp.ne.s32.totalorder %s1443_s22, %s1439_s21 }
   0x9   : > { %s1528_s29 = scalar_select %p48_p0, %s1447_s23, %s50_s28  }
   0xa   : > { %p59_p4 = por %p58_p2, %p57_p1  ;;  %p64_p5 = scmp.eq.s32.totalorder %s1515_s25, 0 }
   0xb   : > { %p1211_p6 = scmp.lt.s32.totalorder %s1451_s24, 3  ;;  %s1537_s7 = sand.u32 1, %s1447_s23  }
   0xc   : > { %p1532_p7 = por %p64_p5, %p63_p3  ;;  %s238_s9 = sand.u32 1, %s1451_s24  }
   0xd   : > { %p1539_p8 = pnand %p1211_p6, %p59_p4  ;;  %s1796_s10 = smul.u32 192, %s1537_s7 }
   0xe   : > { %s1802_s30 = scalar_select %p1532_p7, 1, 0 }
   0xf   : > { %s1803_s8 = scalar_select %p1539_p8, 1, 0 }
  0x10   : > { %s1799_s11 = smul.u32 3072, %s1451_s24  ;;  %s242_s15 = scalar_lea.vmem [#allocation5], %s1796_s10 }
  0x11   : > { %s249_s16 = sshll.u32 %s242_s15, 4  ;;  %s1557_s17 = scalar_lea.sflag [#allocation6], %s238_s9  ;;  %s1555_s16 = int_to_ptr.vmem [resolvable:$true] %s249_s16 }
  0x12   : > { %s1551_s14 = scalar_lea.hbm %s1790_s2, %s1799_s11  ;;  %p1563_p10 = pneg %p1539_p8 }
  0x13   : > { %s1323_s18 = scalar_lea.hbm %s1551_s14, 3072  ;;  %s1328_s27 = scalar_lea.hbm %s1790_s2, 9216 }
  0x14   : > { %p1324_p9 = scmp.ne.s32.totalorder %s1551_s14, %s1323_s18  ;;  %p1329_p13 = scmp.lt.u32.totalorder %s1551_s14, %s1790_s2 }
  0x15   : > { %p1330_p0 = scmp.lt.u32.totalorder %s1328_s27, %s1323_s18  ;;  %p1332_p2 = scmp.lt.u32.totalorder %s1323_s18, %s1551_s14 }
  0x16   : > { %p1326_p11 = pnand %p1563_p10, %p1324_p9 }
  0x17   : > { %p1331_p1 = por %p1330_p0, %p1329_p13 }
  0x18   : > { %p1327_p12 = pneg %p1326_p11 }
  0x19   : > { %p1333_p3 = por %p1332_p2, %p1331_p1 }
  0x1b   : > { %p1334_p4 = pnand %p1333_p3, %p1327_p12 }
  0x1d   : > { %1337 = shalt.err (!%p1334_p4)
}
  0x1e   : > { %s1338_s9 = scalar_lea.vmem %s1555_s16, 3072  ;;  %s1453_s13 = smov [#allocation5]  }
  0x1f   : > { %p1339_p5 = scmp.ne.s32.totalorder %s1555_s16, %s1338_s9  ;;  %s1343_s15 = sshll.u32 %s1453_s13, 4  ;;  %s1344_s15 = int_to_ptr.vmem [resolvable:$false] %s1343_s15 }
  0x20   : > { %s1345_s20 = scalar_lea.vmem %s1344_s15, 6144  ;;  %p1346_p11 = scmp.lt.s32.totalorder %s1555_s16, %s1344_s15 }
  0x21   : > { %p1341_p6 = pnand %p1339_p5, %p1563_p10  ;;  %p1347_p7 = scmp.lt.s32.totalorder %s1345_s20, %s1338_s9 }
  0x23   : > { %p1342_p9 = pneg %p1341_p6  ;;  %p1348_p13 = por %p1347_p7, %p1346_p11 }
  0x25   : > { %p1349_p0 = pnand %p1348_p13, %p1342_p9 }
  0x27   : > { %1352 = shalt.err (!%p1349_p0)
}
  0x28   : > { %s1797_s18 = smov 192   ;;  %s1798_s21 = smov 12  }
  0x29   : > { %1207 = dma.hbm_to_vmem [thread:$0]  (!%p1539_p8), %s1551_s14, 3072, %s1555_s16, %s1557_s17, %s1797_s18, %s1797_s18, %s1798_s21  }
  0x2a   : > { %p1067_p7 = scmp.ge.s32.totalorder %s1451_s24, 1  ;;  %p292_p12 = scmp.lt.s32.totalorder %s1451_s24, 4 }
  0x2b   : > { %s1063_s27 = sshll.u32 %s1537_s7, 3  ;;  %s1064_s12 = sshll.u32 %s1451_s24, 7 }
  0x2c   : > { %p1593_p1 = pnand %p1067_p7, %p292_p12  ;;  %s224_s9 = scalar_lea.vmem [#allocation3], %s1063_s27 }
  0x2d   : > { %s231_s13 = sshll.u32 %s224_s9, 4  ;;  %s1601_s10 = scalar_lea.hbm %s1789_s1, %s1064_s12  ;;  %s232_s13 = int_to_ptr.vmem [resolvable:$true] %s231_s13 }
  0x2e   : > { %s1805_s28 = scalar_select %p1593_p1, 1, 0 }
  0x2f   : > { %s221_s14 = scalar_lea.sflag [#allocation4], %s1537_s7  ;;  %s1353_s16 = scalar_lea.hbm %s1601_s10, 128 }
  0x30   : > { %p1354_p2 = scmp.ne.s32.totalorder %s1601_s10, %s1353_s16  ;;  %s1358_s27 = scalar_lea.hbm %s1789_s1, 384 }
  0x31   : > { %p1359_p5 = scmp.lt.u32.totalorder %s1601_s10, %s1789_s1  ;;  %p1360_p6 = scmp.lt.u32.totalorder %s1358_s27, %s1353_s16 }
  0x32   : > { %p1356_p3 = pnand %p1354_p2, %p1563_p10  ;;  %p1362_p11 = scmp.lt.u32.totalorder %s1353_s16, %s1601_s10 }
  0x33   : > { %p1361_p9 = por %p1360_p6, %p1359_p5 }
  0x34   : > { %p1357_p4 = pneg %p1356_p3 }
  0x35   : > { %p1363_p13 = por %p1362_p11, %p1361_p9 }
  0x37   : > { %p1364_p0 = pnand %p1363_p13, %p1357_p4 }
  0x39   : > { %1367 = shalt.err (!%p1364_p0)
}
  0x3a   : > { %s1368_s12 = scalar_lea.vmem %s232_s13, 128  ;;  %s1456_s15 = smov [#allocation3]  }
  0x3b   : > { %p1369_p7 = scmp.ne.s32.totalorder %s232_s13, %s1368_s12  ;;  %s1373_s20 = sshll.u32 %s1456_s15, 4  ;;  %s1374_s20 = int_to_ptr.vmem [resolvable:$false] %s1373_s20 }
  0x3c   : > { %s1375_s18 = scalar_lea.vmem %s1374_s20, 256  ;;  %p1376_p3 = scmp.lt.s32.totalorder %s232_s13, %s1374_s20 }
  0x3d   : > { %p1371_p12 = pnand %p1369_p7, %p1563_p10  ;;  %p1377_p1 = scmp.lt.s32.totalorder %s1375_s18, %s1368_s12 }
  0x3f   : > { %p1372_p2 = pneg %p1371_p12  ;;  %p1378_p8 = por %p1377_p1, %p1376_p3 }
  0x41   : > { %p1379_p5 = pnand %p1378_p8, %p1372_p2 }
  0x43   : > { %1382 = shalt.err (!%p1379_p5)
}
  0x44   : > { %p1806_p6 = scmp.ne.s32.totalorder %s1803_s8, 0  ;;  %s1807_s11 = smul.u32 3072, %s1451_s24 }
  0x45   : > { %s1808_s9 = smul.u32 192, %s1537_s7 }
  0x46   : > { %1204 = dma.hbm_to_vmem [thread:$0]  (!%p1806_p6), %s1601_s10, 128, %s232_s13, %s221_s14  }
  0x47   : > { %s1626_s27 = scalar_lea.hbm %s1791_s3, %s1807_s11  ;;  %s263_s12 = scalar_lea.vmem [#allocation7], %s1808_s9 }
  0x48   : > { %s270_s15 = sshll.u32 %s263_s12, 4  ;;  %s1383_s20 = scalar_lea.hbm %s1626_s27, 3072  ;;  %s1630_s15 = int_to_ptr.vmem [resolvable:$true] %s270_s15 }
  0x49   : > { %p1384_p8 = scmp.ne.s32.totalorder %s1626_s27, %s1383_s20  ;;  %s1388_s13 = scalar_lea.hbm %s1791_s3, 9216 }
  0x4a   : > { %p1389_p9 = scmp.lt.u32.totalorder %s1626_s27, %s1791_s3  ;;  %p1390_p11 = scmp.lt.u32.totalorder %s1388_s13, %s1383_s20 }
  0x4b   : > { %p1386_p1 = pnand %p1384_p8, %p1563_p10  ;;  %p1392_p0 = scmp.lt.u32.totalorder %s1383_s20, %s1626_s27 }
  0x4c   : > { %p1391_p13 = por %p1390_p11, %p1389_p9 }
  0x4d   : > { %p1387_p4 = pneg %p1386_p1 }
  0x4e   : > { %p1393_p7 = por %p1392_p0, %p1391_p13 }
  0x50   : > { %p1394_p12 = pnand %p1393_p7, %p1387_p4 }
  0x52   : > { %1397 = shalt.err (!%p1394_p12)
}
  0x53   : > { %s1398_s7 = scalar_lea.vmem %s1630_s15, 3072  ;;  %s1457_s11 = smov [#allocation7]  }
  0x54   : > { %p1399_p2 = scmp.ne.s32.totalorder %s1630_s15, %s1398_s7  ;;  %s1403_s21 = sshll.u32 %s1457_s11, 4  ;;  %s1404_s21 = int_to_ptr.vmem [resolvable:$false] %s1403_s21 }
  0x55   : > { %s1405_s16 = scalar_lea.vmem %s1404_s21, 6144  ;;  %p1406_p8 = scmp.lt.s32.totalorder %s1630_s15, %s1404_s21 }
  0x56   : > { %p1401_p3 = pnand %p1399_p2, %p1563_p10  ;;  %p1407_p1 = scmp.lt.s32.totalorder %s1405_s16, %s1398_s7 }
  0x58   : > { %p1402_p5 = pneg %p1401_p3  ;;  %p1408_p9 = por %p1407_p1, %p1406_p8 }
  0x5a   : > { %p1409_p11 = pnand %p1408_p9, %p1402_p5 }
  0x5c   : > { %1412 = shalt.err (!%p1409_p11)
}
  0x5d   : > { %s1809_s9 = smov 12   ;;  %s1810_s12 = smov 192  }
  0x5e   : > { %1210 = dma.hbm_to_vmem [thread:$0]  (!%p1806_p6), %s1626_s27, 3072, %s1630_s15, %s1557_s17, %s1810_s12, %s1810_s12, %s1809_s9  }
  0x5f   : > { %p1811_p10 = scmp.ne.s32.totalorder %s1805_s28, 0 }
  0x60   : > { %s298_s19 = sand.u32 (!%p1811_p10), 1, %s1443_s22   ;;  %p1812_p4 = scmp.ne.s32.totalorder (!%p1811_p10), %s1802_s30, 0 }
  0x61   : > { %296 = sbr.rel (%p1811_p10) target bundleno = 445 (0x1bd), region = 44  ;;  %s1068_s20 = sshll.u32 (!%p1811_p10), %s298_s19, 3 }
  0x62   : > { %s299_s24 = scalar_lea.sflag (!%p1811_p10), [#allocation4], %s298_s19  ;;  %s1660_s10 = scalar_lea.vmem (!%p1811_p10), [#allocation3], %s1068_s20 }
  0x68   : > { %1430 = dma.done.wait (%p1812_p4), %s299_s24, 128  }
  0x69   : > { %1432 = vsyncadd (%p1812_p4), %s299_s24, 4294967168  ;;  %s307_s8 = sand.u32 1, %s1515_s25   ;;  %s1193_s13 = smul.u32 192, %s298_s19 }
  0x6a   : > { %s308_s17 = scalar_lea.sflag [#allocation6], %s307_s8 }
  0x6b   : > { %s1667_s27 = scalar_lea.vmem [#allocation5], %s1193_s13 }
  0x6c   : > { %1434 = dma.done.wait (%p1812_p4), %s308_s17, 6144  }
  0x6d   : > { %1436 = vsyncadd (%p1812_p4), %s308_s17, 4294961152  ;;  %p366_p6 = scmp.lt.s32.totalorder %s1515_s25, 2  ;;  %s1690_s20 = scalar_lea.vmem [#allocation7], %s1193_s13 }
  0x6e   : > { %p1070_p13 = scmp.ne.s32.totalorder %s1515_s25, 0 }
  0x6f   : > { %s367_s28 = scalar_select %p366_p6, %s1515_s25, 2 }
  0x70   : > { %382 = sbr.rel (%p1070_p13) target bundleno = 119 (0x77), region = 60  ;;  %v383_v0 = vld [vmem:[%s1788_s0] sm:$0xff] (!%p1070_p13) }
  0x71   : > { %s1194_s15 = smul.u32 3, %s367_s28  ;;  %s1069_s14 = sshll.u32 %s367_s28, 3  ;;  %384 = vst [vmem:[#allocation2] sm:$0xff] (!%p1070_p13), %v383_v0 }
  0x72   : > { %s1678_s11 = scalar_lea.vmem %s1794_s6, %s1069_s14 }
  0x73   : > { %s1683_s9 = scalar_lea.vmem %s1792_s4, %s1194_s15  ;;  %s1688_s30 = scalar_lea.vmem %s1793_s5, %s1194_s15 }
  0x77 PF: > { %v1249_v1 = vld [vmem:[%s1667_s27 + $0x4] ss:$12 sps:$4 sm:$0xff]   ;;  %v1251_v2 = vld [vmem:[%s1667_s27] ss:$12 sps:$4 sm:$0xff]   ;;  %v1458_v3 = vmov 0.0   ;;  %v1459_v4 = vmov 0   ;;  %v422_v59 = vlaneseq }
  0x78   : > { %1141 = vmatprep.subr.bf16.mxu1 %v1458_v3  ;;  %597 = vmatprep.mubr.bf16.mxu0 %v1459_v4  ;;  %v1252_v5 = vld [vmem:[%s1667_s27 + $0x1c] ss:$12 sps:$4 sm:$0xff]   ;;  %vm1460_vm0 = vmmov 0   ;;  %v1254_v6 = vld [vmem:[%s1667_s27 + $0x18] ss:$12 sps:$4 sm:$0xff]  }
  0x79   : > { %565 = vmatprep.subr.bf16.mxu0 %v1249_v1  ;;  %1157 = vmatprep.mubr.msk.bf16.mxu1 %vm1460_vm0, %v1458_v3  ;;  %v1255_v7 = vld [vmem:[%s1667_s27 + $0x34] ss:$12 sps:$4 sm:$0xff]   ;;  %v1257_v8 = vld [vmem:[%s1667_s27 + $0x30] ss:$12 sps:$4 sm:$0xff]   ;;  %v1258_v9 = vld [vmem:[%s1667_s27 + $0x4c] ss:$12 sps:$4 sm:$0xff]  }
  0x7a   : > { %566 = vmatpush1.bf16.msra.mxu0 %v1251_v2  ;;  %v1269_v10 = vld [vmem:[%s1667_s27 + $0x8] ss:$12 sps:$4 sm:$0xff]   ;;  %v1261_v12 = vld [vmem:[%s1667_s27 + $0x64] ss:$12 sps:$4 sm:$0xff]   ;;  %v1273_v13 = vld [vmem:[%s1667_s27 + $0x20] ss:$12 sps:$4 sm:$0xff]  }
  0x7b   : > { %567 = vmatprep.subr.bf16.mxu0 %v1252_v5  ;;  %v1260_v11 = vld [vmem:[%s1667_s27 + $0x48] ss:$12 sps:$4 sm:$0xff]   ;;  %1142 = vmatpush3.bf16.msra.mxu1 %v1269_v10  ;;  %v1263_v14 = vld [vmem:[%s1667_s27 + $0x60] ss:$12 sps:$4 sm:$0xff]   ;;  %v1275_v15 = vld [vmem:[%s1667_s27 + $0x38] ss:$12 sps:$4 sm:$0xff]  }
  0x7c   : > { %1143 = vmatprep.subr.bf16.mxu1 %v1458_v3  ;;  %v1264_v16 = vld [vmem:[%s1667_s27 + $0x7c] ss:$12 sps:$4 sm:$0xff]   ;;  %v1266_v17 = vld [vmem:[%s1667_s27 + $0x78] ss:$12 sps:$4 sm:$0xff]   ;;  %v1267_v19 = vld [vmem:[%s1667_s27 + $0x94] ss:$12 sps:$4 sm:$0xff]  }
  0x7d   : > { %v1279_v18 = vld [vmem:[%s1667_s27 + $0x50] ss:$12 sps:$4 sm:$0xff]   ;;  %v1283_v21 = vld [vmem:[%s1667_s27 + $0x68] ss:$12 sps:$4 sm:$0xff]   ;;  %v1271_v22 = vld [vmem:[%s1667_s27 + $0xac] ss:$12 sps:$4 sm:$0xff]  }
  0x7e   : > { %568 = vmatpush1.bf16.msra.mxu0 %v1254_v6  ;;  %v1270_v20 = vld [vmem:[%s1667_s27 + $0x90] ss:$12 sps:$4 sm:$0xff]   ;;  %v1274_v23 = vld [vmem:[%s1667_s27 + $0xa8] ss:$12 sps:$4 sm:$0xff]   ;;  %v1287_v25 = vld [vmem:[%s1667_s27 + $0x80] ss:$12 sps:$4 sm:$0xff]  }
  0x7f   : > { %569 = vmatprep.subr.bf16.mxu0 %v1255_v7  ;;  %1144 = vmatpush3.bf16.msra.mxu1 %v1273_v13  ;;  %v385_v24 = vld [vmem:[#allocation2] sm:$0xff]  ;;  %v1278_v26 = vld [vmem:[%s1690_s20 + $0x4] ss:$12 sps:$4 sm:$0xff]   ;;  %v1286_v33 = vld [vmem:[%s1690_s20 + $0x34] ss:$12 sps:$4 sm:$0xff]   ;;  %v423_v60 = vshrl.u32 %v422_v59, 7 }
  0x80   : > { %1145 = vmatprep.subr.bf16.mxu1 %v1458_v3  ;;  %v387_v27 = vpack.c.bf16 %v385_v24, %v385_v24  ;;  %v1276_v28 = vld [vmem:[%s1690_s20] ss:$12 sps:$4 sm:$0xff]   ;;  %v1291_v29 = vld [vmem:[%s1667_s27 + $0x98] ss:$12 sps:$4 sm:$0xff]   ;;  %v1282_v30 = vld [vmem:[%s1690_s20 + $0x1c] ss:$12 sps:$4 sm:$0xff]  }
  0x81   : > { %v1280_v31 = vld [vmem:[%s1690_s20 + $0x18] ss:$12 sps:$4 sm:$0xff]   ;;  %v1295_v32 = vld [vmem:[%s1667_s27 + $0xb0] ss:$12 sps:$4 sm:$0xff]   ;;  %v1302_v35 = vld [vmem:[%s1690_s20 + $0x8] ss:$12 sps:$4 sm:$0xff]  }
  0x82   : > { %570 = vmatpush1.bf16.msra.mxu0 %v1257_v8  ;;  %v1284_v34 = vld [vmem:[%s1690_s20 + $0x30] ss:$12 sps:$4 sm:$0xff]   ;;  %v1290_v36 = vld [vmem:[%s1690_s20 + $0x4c] ss:$12 sps:$4 sm:$0xff]   ;;  %v1288_v37 = vld [vmem:[%s1690_s20 + $0x48] ss:$12 sps:$4 sm:$0xff]  }
  0x83   : > { %571 = vmatprep.subr.bf16.mxu0 %v1258_v9  ;;  %1146 = vmatpush3.bf16.msra.mxu1 %v1275_v15  ;;  %v1306_v38 = vld [vmem:[%s1690_s20 + $0x20] ss:$12 sps:$4 sm:$0xff]   ;;  %v1294_v39 = vld [vmem:[%s1690_s20 + $0x64] ss:$12 sps:$4 sm:$0xff]   ;;  %v1298_v42 = vld [vmem:[%s1690_s20 + $0x7c] ss:$12 sps:$4 sm:$0xff]  }
  0x84   : > { %1147 = vmatprep.subr.bf16.mxu1 %v1458_v3  ;;  %v1292_v40 = vld [vmem:[%s1690_s20 + $0x60] ss:$12 sps:$4 sm:$0xff]   ;;  %v1307_v41 = vld [vmem:[%s1690_s20 + $0x38] ss:$12 sps:$4 sm:$0xff]   ;;  %v1308_v44 = vld [vmem:[%s1690_s20 + $0x50] ss:$12 sps:$4 sm:$0xff]  }
  0x85   : > { %v1296_v43 = vld [vmem:[%s1690_s20 + $0x78] ss:$12 sps:$4 sm:$0xff]   ;;  %v1301_v45 = vld [vmem:[%s1690_s20 + $0x94] ss:$12 sps:$4 sm:$0xff]   ;;  %v1299_v46 = vld [vmem:[%s1690_s20 + $0x90] ss:$12 sps:$4 sm:$0xff]  }
  0x86   : > { %572 = vmatpush1.bf16.msra.mxu0 %v1260_v11  ;;  %v1309_v47 = vld [vmem:[%s1690_s20 + $0x68] ss:$12 sps:$4 sm:$0xff]   ;;  %v1305_v48 = vld [vmem:[%s1690_s20 + $0xac] ss:$12 sps:$4 sm:$0xff]   ;;  %v1312_v54 = vld [vmem:[%s1690_s20 + $0xb0] ss:$12 sps:$4 sm:$0xff]  }
  0x87   : > { %573 = vmatprep.subr.bf16.mxu0 %v1261_v12  ;;  %1148 = vmatpush3.bf16.msra.mxu1 %v1279_v18  ;;  %v1303_v49 = vld [vmem:[%s1690_s20 + $0xa8] ss:$12 sps:$4 sm:$0xff]   ;;  %v1310_v51 = vld [vmem:[%s1690_s20 + $0x80] ss:$12 sps:$4 sm:$0xff]   ;;  %v1311_v53 = vld [vmem:[%s1690_s20 + $0x98] ss:$12 sps:$4 sm:$0xff]  }
  0x88   : > { %1149 = vmatprep.subr.bf16.mxu1 %v1458_v3  ;;  %v1761_v50 = vld [vmem:[%s1660_s10] sm:$0xff]  ;;  %v424_v61 = vsub.s32 0, %v423_v60  ;;  %v679_v62 = vld [vmem:[%s1688_s30] sm:$0x7]  ;;  %v428_v0 = vsub.s32 1, %v423_v60 }
  0x89   : > { %v646_v52 = vpack.c.bf16 %v1761_v50, %v1761_v50  ;;  %v420_v63 = vld [vmem:[%s1683_s9] sm:$0x7] }
  0x8a   : > { %574 = vmatpush1.bf16.msra.mxu0 %v1263_v14  ;;  %v425_v1 = vrot.slane %v420_v63, %v424_v61  ;;  %v684_v2 = vrot.slane %v679_v62, %v424_v61  ;;  %v688_v5 = vrot.slane %v679_v62, %v428_v0 }
  0x8b   : > { %575 = vmatprep.subr.bf16.mxu0 %v1264_v16  ;;  %1150 = vmatpush3.bf16.msra.mxu1 %v1283_v21  ;;  %v432_v21 = vsub.s32 2, %v423_v60 }
  0x8c   : > { %1151 = vmatprep.subr.bf16.mxu1 %v1458_v3  ;;  %v1181_v6 = vadd.f32 %v684_v2, %v425_v1 }
  0x8d   : > { %v433_v24 = vrot.slane %v420_v63, %v432_v21 }
  0x8e   : > { %576 = vmatpush1.bf16.msra.mxu0 %v1266_v17 }
  0x8f   : > { %577 = vmatprep.subr.bf16.mxu0 %v1267_v19  ;;  %1152 = vmatpush3.bf16.msra.mxu1 %v1287_v25 }
  0x90   : > { %1153 = vmatprep.subr.bf16.mxu1 %v1458_v3 }
  0x92   : > { %578 = vmatpush1.bf16.msra.mxu0 %v1270_v20 }
  0x93   : > { %579 = vmatprep.subr.bf16.mxu0 %v1271_v22  ;;  %1154 = vmatpush3.bf16.msra.mxu1 %v1291_v29  ;;  %v692_v22 = vrot.slane %v679_v62, %v432_v21 }
  0x94   : > { %1155 = vmatprep.subr.bf16.mxu1 %v1458_v3 }
  0x96   : > { %580 = vmatpush1.bf16.msra.mxu0 %v1274_v23 }
  0x97   : > { %824 = vmatprep.subr.bf16.mxu0 %v1278_v26  ;;  %1156 = vmatpush3.bf16.msra.mxu1 %v1295_v32 }
  0x98   : > { %1161 = vmatprep.subr.bf16.mxu1 %v1458_v3 }
  0x99   : > { %598 = vmatmul.mubr.bf16.vlgmr.msra.gmra.mrb[0].mxu0 %v387_v27 }
  0x9a   : > { %825 = vmatpush1.bf16.msra.mxu0 %v1276_v28  ;;  %856 = vmatprep.mubr.bf16.mxu0 %v1459_v4  ;;  %v429_v4 = vrot.slane %v420_v63, %v428_v0 }
  0x9b   : > { %826 = vmatprep.subr.bf16.mxu0 %v1282_v30  ;;  %1158 = vmatmul.mubr.bf16.vlgmr.msra.gmra.mrb[0].mxu1 %v387_v27 }
  0x9c   : > { %1162 = vmatpush3.bf16.msra.mxu1 %v1302_v35  ;;  %1177 = vmatprep.mubr.msk.bf16.mxu1 %vm1460_vm0, %v1458_v3  ;;  %v1183_v8 = vadd.f32 %v688_v5, %v429_v4 }
  0x9d   : > { %1163 = vmatprep.subr.bf16.mxu1 %v1458_v3 }
  0x9e   : > { %827 = vmatpush1.bf16.msra.mxu0 %v1280_v31 }
  0x9f   : > { %828 = vmatprep.subr.bf16.mxu0 %v1286_v33 }
  0xa0   : > { %1164 = vmatpush3.bf16.msra.mxu1 %v1306_v38 }
  0xa1   : > { %1165 = vmatprep.subr.bf16.mxu1 %v1458_v3 }
  0xa2   : > { %829 = vmatpush1.bf16.msra.mxu0 %v1284_v34 }
  0xa3   : > { %830 = vmatprep.subr.bf16.mxu0 %v1290_v36 }
  0xa4   : > { %1166 = vmatpush3.bf16.msra.mxu1 %v1307_v41 }
  0xa5   : > { %1167 = vmatprep.subr.bf16.mxu1 %v1458_v3 }
  0xa6   : > { %831 = vmatpush1.bf16.msra.mxu0 %v1288_v37 }
  0xa7   : > { %832 = vmatprep.subr.bf16.mxu0 %v1294_v39 }
  0xa8   : > { %1168 = vmatpush3.bf16.msra.mxu1 %v1308_v44 }
  0xa9   : > { %1169 = vmatprep.subr.bf16.mxu1 %v1458_v3 }
  0xaa   : > { %833 = vmatpush1.bf16.msra.mxu0 %v1292_v40 }
  0xab   : > { %834 = vmatprep.subr.bf16.mxu0 %v1298_v42 }
  0xac   : > { %1170 = vmatpush3.bf16.msra.mxu1 %v1309_v47 }
  0xad   : > { %1171 = vmatprep.subr.bf16.mxu1 %v1458_v3 }
  0xae   : > { %835 = vmatpush1.bf16.msra.mxu0 %v1296_v43 }
  0xaf   : > { %836 = vmatprep.subr.bf16.mxu0 %v1301_v45 }
  0xb0   : > { %1172 = vmatpush3.bf16.msra.mxu1 %v1310_v51 }
  0xb1   : > { %1173 = vmatprep.subr.bf16.mxu1 %v1458_v3 }
  0xb2   : > { %837 = vmatpush1.bf16.msra.mxu0 %v1299_v46 }
  0xb3   : > { %838 = vmatprep.subr.bf16.mxu0 %v1305_v48 }
  0xb4   : > { %1174 = vmatpush3.bf16.msra.mxu1 %v1311_v53 }
  0xb5   : > { %1175 = vmatprep.subr.bf16.mxu1 %v1458_v3 }
  0xb6   : > { %839 = vmatpush1.bf16.msra.mxu0 %v1303_v49 }
  0xb8   : > { %1176 = vmatpush3.bf16.msra.mxu1 %v1312_v54 }
  0xb9   : > { %857 = vmatmul.mubr.bf16.vlgmr.msra.gmra.mrb[0].mxu0 %v646_v52 }
  0xbb   : > { %1178 = vmatmul.mubr.bf16.vlgmr.msra.gmra.mrb[4].mxu1 %v646_v52 }
 0x16e   : > { %v640_v55 = vpop.f32.mrb[0].mxu1 }
 0x16f   : > { %v1159_v56 = vpop.f32.mrb[1].mxu1  ;;  %v641_v28 = vadd.f32 %v640_v55, %v433_v24 }
 0x170   : > { %v643_v57 = vpop.f32.mrb[2].mxu1 }
 0x171   : > { %v1160_v58 = vpop.f32.mrb[3].mxu1 }
 0x18c   : > { %v858_v7 = vpop.f32.mrb[0].mxu0 }
 0x18d   : > { %v1182_v3 = vadd.f32 %v1181_v6, %v858_v7  ;;  %v860_v9 = vpop.f32.mrb[1].mxu0 }
 0x18e   : > { %v862_v10 = vpop.f32.mrb[2].mxu0  ;;  %v1184_v13 = vadd.f32 %v1183_v8, %v860_v9  ;;  %v899_v15 = vpop.f32.mrb[4].mxu1 }
 0x18f   : > { %v1119_v11 = vmul.f32 -1.442695, %v1182_v3  ;;  %v863_v12 = vpop.f32.mrb[3].mxu0  ;;  %v1179_v16 = vpop.f32.mrb[5].mxu1  ;;  %v900_v26 = vadd.f32 %v899_v15, %v692_v22 }
 0x190   : > { %v1120_v14 = vmul.f32 -1.442695, %v1184_v13  ;;  %v902_v17 = vpop.f32.mrb[6].mxu1 }
 0x191   : > { %1313 = vpow2.f32 %v1119_v11  ;;  %v1180_v18 = vpop.f32.mrb[7].mxu1 }
 0x192   : > { %1315 = vpow2.f32 %v1120_v14 }
 0x19b   : > { %v1314_v19 = vpop.eup %1313 }
 0x19c   : > { %v909_v20 = vadd.f32 1.0, %v1314_v19  ;;  %v1316_v23 = vpop.eup %1315 }
 0x19d   : > { %v916_v25 = vadd.f32 1.0, %v1316_v23 }
 0x19e   : > { %1317 = vrcp.f32 %v909_v20 }
 0x19f   : > { %1319 = vrcp.f32 %v916_v25 }
 0x1a8   : > { %v1318_v27 = vpop.eup %1317 }
 0x1a9   : > { %v919_v29 = vmul.f32 %v1318_v27, %v900_v26  ;;  %v1320_v31 = vpop.eup %1319 }
 0x1aa   : > { %v922_v32 = vsub.f32 1.0, %v1320_v31  ;;  %v924_v34 = vmul.f32 %v1320_v31, %v1761_v50 }
 0x1ab   : > { %v920_v30 = vadd.f32 %v919_v29, %v641_v28 }
 0x1ad   : > { %1321 = vtanh.f32 %v920_v30 }
 0x1b7   : > { %v1322_v33 = vpop.eup %1321 }
 0x1b8   : > { %v923_v35 = vmul.f32 %v1322_v33, %v922_v32 }
 0x1ba   : > { %v925_v36 = vadd.f32 %v924_v34, %v923_v35 }
 0x1bc   : > { %926 = vst [vmem:[%s1678_s11] sm:$0xff] %v925_v36  ;;  %927 = vst [vmem:[#allocation2] sm:$0xff] %v925_v36 }
 0x1bd PF: > { %p19_p0 = scmp.ge.s32.totalorder %s1518_s26, 5   ;;  %s1813_s21 = smov %s1443_s22 }
 0x1be   : > { %s1814_s22 = smov %s1447_s23  ;;  %s1815_s23 = smov %s1528_s29 }
 0x1bf   : > { %s1816_s24 = smov %s1518_s26  ;;  %21 = sbr.rel (!%p19_p0) target bundleno = 5 (0x5), region = 118 }
 0x1c6   :  { %947 = vsyncpa [#allocation4], 1 }
 0x1c7   :  { %949 = vsyncpa [#allocation4 + $0x1], 1 }
 0x1c8   :  { %950 = vsyncpa [#allocation6], 1 }
 0x1c9   :  { %952 = vsyncpa [#allocation6 + $0x1], 1 }

</bundles_post_ra>
